<compile_context>
chip_gen: v5e
topology: v5e:2x2
jax: 0.10.0
libtpu: 0.0.40
codegen_flags: <defaults>
</compile_context>

<pallas_src>
import math
import functools

import jax
import jax.numpy as jnp
from jax.experimental import pallas as pl
from jax.experimental.pallas import tpu as pltpu


# ----------------------------- Pallas kernel ---------------------------------
def _pointnext_kernel(x_ref, w1_ref, b1_ref, w2_ref, b2_ref, w3_ref, b3_ref,
                      wh_ref, bh_ref, out_ref, pool_ref, *, c_in):
    """Per-point shared MLP -> running max-pool -> head MLP.

    Grid = (B, N // TILE_N).  Axis 0 (batch) is parallel, axis 1 (point tiles)
    is a reduction axis: `pool_ref` (VMEM scratch, shape (8, c3)) carries
    per-sublane running maxima across point tiles; the final sublane reduce +
    head matmul + output store happen on the last tile.
    """
    t = pl.program_id(1)

    @pl.when(t == 0)
    def _init():
        pool_ref[...] = jnp.full(pool_ref.shape, -jnp.inf, pool_ref.dtype)

    x = x_ref[0]                                        # (TILE_N, C_IN) f32
    tile_n = x.shape[0]
    c1 = w1_ref.shape[1]

    # ---- layer 1: tiny K=c_in contraction as VPU FMAs (keep the MXU free) ---
    h = jnp.broadcast_to(b1_ref[...], (tile_n, c1))
    for k in range(c_in):                               # static python unroll
        h = h + x[:, k:k + 1] * w1_ref[k:k + 1, :]
    h = jnp.maximum(h, 0.0)

    # ---- layers 2 / 3: bf16 MXU matmuls with f32 accumulation ---------------
    h = jnp.dot(h.astype(jnp.bfloat16), w2_ref[...],
                preferred_element_type=jnp.float32) + b2_ref[...]
    h = jnp.maximum(h, 0.0)
    h = jnp.dot(h.astype(jnp.bfloat16), w3_ref[...],
                preferred_element_type=jnp.float32) + b3_ref[...]

    # ---- running global max-pool: per-sublane partial maxima (pure VPU) -----
    c3 = h.shape[1]
    part = jnp.max(h.reshape(tile_n // 8, 8, c3), axis=0)       # (8, c3)
    pool_ref[...] = jnp.maximum(pool_ref[...], part)

    @pl.when(t == pl.num_programs(1) - 1)
    def _finalize():
        g = jnp.max(pool_ref[...], axis=0, keepdims=True)       # (1, c3), XLU once
        emb = jnp.dot(g.astype(jnp.bfloat16), wh_ref[...],
                      preferred_element_type=jnp.float32) + bh_ref[...]
        out_ref[0] = emb.astype(out_ref.dtype)                  # (1, d_emb)


def pointnext_encode(point_cloud, params, *, tile_n=None):
    """point_cloud: (B, N, C_in) float32 -> (B, D_EMB) float32."""
    B, N, C_in = point_cloud.shape
    w1, b1, w2, b2, w3, b3, wh, bh = params
    c1, c2, c3, d_emb = w1.shape[1], w2.shape[1], w3.shape[1], wh.shape[1]

    if tile_n is None:
        tile_n = N
        for cand in (1024, 512, 256, 128, 64, 32, 16, 8):
            if N % cand == 0:
                tile_n = cand
                break
    assert N % tile_n == 0, "num points must be divisible by tile_n"
    assert tile_n % 8 == 0, "tile_n must be sublane aligned"

    # Cast MXU operands to bf16 once (accumulation inside the kernel is f32).
    w2_b = w2.astype(jnp.bfloat16)
    w3_b = w3.astype(jnp.bfloat16)
    wh_b = wh.astype(jnp.bfloat16)

    full = lambda shape: pl.BlockSpec(shape, lambda b, t: (0, 0))

    grid_spec = pltpu.PrefetchScalarGridSpec(
        num_scalar_prefetch=0,
        grid=(B, N // tile_n),
        in_specs=[
            pl.BlockSpec((1, tile_n, C_in), lambda b, t: (b, t, 0)),  # points
            full((C_in, c1)), full((1, c1)),
            full((c1, c2)),   full((1, c2)),
            full((c2, c3)),   full((1, c3)),
            full((c3, d_emb)), full((1, d_emb)),
        ],
        out_specs=pl.BlockSpec((1, 1, d_emb), lambda b, t: (b, 0, 0)),
        scratch_shapes=[pltpu.VMEM((8, c3), jnp.float32)],
    )

    kernel = functools.partial(_pointnext_kernel, c_in=C_in)

    out = pl.pallas_call(
        kernel,
        out_shape=jax.ShapeDtypeStruct((B, 1, d_emb), jnp.float32),
        grid_spec=grid_spec,
        compiler_params=pltpu.CompilerParams(
            dimension_semantics=("parallel", "arbitrary"),
            vmem_limit_bytes=32 << 20),      # stays well under v7x's 64 MiB
    )(point_cloud, w1, b1, w2_b, b2, w3_b, b3, wh_b, bh)
    return out.reshape(B, d_emb)


# --------------------------- parameter init ----------------------------------
def init_params(key, c_in=3, c1=64, c2=128, c3=128, d_emb=32):
    ks = jax.random.split(key, 8)
    def lin(k, fan_in, fan_out):
        lim = 1.0 / math.sqrt(fan_in)
        return jax.random.uniform(k, (fan_in, fan_out), jnp.float32, -lim, lim)
    w1 = lin(ks[0], c_in, c1); b1 = jax.random.uniform(ks[1], (1, c1), jnp.float32, -0.1, 0.1)
    w2 = lin(ks[2], c1, c2);   b2 = jax.random.uniform(ks[3], (1, c2), jnp.float32, -0.1, 0.1)
    w3 = lin(ks[4], c2, c3);   b3 = jax.random.uniform(ks[5], (1, c3), jnp.float32, -0.1, 0.1)
    wh = lin(ks[6], c3, d_emb); bh = jax.random.uniform(ks[7], (1, d_emb), jnp.float32, -0.1, 0.1)
    return (w1, b1, w2, b2, w3, b3, wh, bh)


def d3clip_forward(point_cloud, params):
    """Mirrors D3CLIP.forward: just the point-cloud encoding."""
    return pointnext_encode(point_cloud, params)


# pure-JAX reference (same bf16-MXU / f32-accumulation numerics as the kernel)
def _reference(point_cloud, params):
    w1, b1, w2, b2, w3, b3, wh, bh = params
    bf = jnp.bfloat16
    c_in = point_cloud.shape[-1]
    h = b1 + sum(point_cloud[..., k:k + 1] * w1[k] for k in range(c_in))
    h = jnp.maximum(h, 0.0)
    h = jnp.dot(h.astype(bf), w2.astype(bf),
                preferred_element_type=jnp.float32) + b2
    h = jnp.maximum(h, 0.0)
    h = jnp.dot(h.astype(bf), w3.astype(bf),
                preferred_element_type=jnp.float32) + b3
    g = jnp.max(h, axis=1)                                  # global max pool
    return jnp.dot(g.astype(bf), wh.astype(bf),
                   preferred_element_type=jnp.float32) + bh


if __name__ == "__main__":
    key = jax.random.PRNGKey(0)
    k_pc, k_par = jax.random.split(key)

    B, N, C_IN = 2, 128, 3
    point_cloud = jax.random.normal(k_pc, (B, N, C_IN), jnp.float32)
    params = init_params(k_par, c_in=C_IN)

    # unused-in-forward parameters from __init__ (kept for parity)
    temp = jnp.array([math.log(10.0)], jnp.float32)
    bias = jnp.array([-10.0], jnp.float32)
    del temp, bias

    emb = jax.block_until_ready(d3clip_forward(point_cloud, params))
    ref = _reference(point_cloud, params)

    assert emb.shape == (B, 32), emb.shape
    assert bool(jnp.all(jnp.isfinite(emb)))
    assert bool(jnp.allclose(emb, ref, rtol=1e-2, atol=1e-2)), \
        float(jnp.max(jnp.abs(emb - ref)))

    print("KERNEL_OK")
</pallas_src>

<mosaic_0001>
module attributes {stable_mosaic.version = 11 : i64} {
  func.func @_pointnext_kernel(%arg0: i32, %arg1: i32, %arg2: memref<1x128x3xf32, #tpu.memory_space<vmem>>, %arg3: memref<3x64xf32, #tpu.memory_space<vmem>>, %arg4: memref<1x64xf32, #tpu.memory_space<vmem>>, %arg5: memref<64x128xbf16, #tpu.memory_space<vmem>>, %arg6: memref<1x128xf32, #tpu.memory_space<vmem>>, %arg7: memref<128x128xbf16, #tpu.memory_space<vmem>>, %arg8: memref<1x128xf32, #tpu.memory_space<vmem>>, %arg9: memref<128x32xbf16, #tpu.memory_space<vmem>>, %arg10: memref<1x32xf32, #tpu.memory_space<vmem>>, %arg11: memref<1x1x32xf32, #tpu.memory_space<vmem>>, %arg12: memref<8x128xf32, #tpu.memory_space<vmem>>) attributes {dimension_semantics = [#tpu.dimension_semantics<parallel>, #tpu.dimension_semantics<arbitrary>], iteration_bounds = array<i64: 2, 1>, scalar_prefetch = 0 : i64, scratch_operands = 1 : i64, tpu.core_type = #tpu.core_type<tc>, window_params = [{transform_indices = @transform_0, window_bounds = array<i64: 1, 128, 3>}, {pipeline_mode = #tpu.pipeline_mode<synchronous>, transform_indices = @transform_1, window_bounds = array<i64: 3, 64>}, {pipeline_mode = #tpu.pipeline_mode<synchronous>, transform_indices = @transform_2, window_bounds = array<i64: 1, 64>}, {pipeline_mode = #tpu.pipeline_mode<synchronous>, transform_indices = @transform_3, window_bounds = array<i64: 64, 128>}, {pipeline_mode = #tpu.pipeline_mode<synchronous>, transform_indices = @transform_4, window_bounds = array<i64: 1, 128>}, {pipeline_mode = #tpu.pipeline_mode<synchronous>, transform_indices = @transform_5, window_bounds = array<i64: 128, 128>}, {pipeline_mode = #tpu.pipeline_mode<synchronous>, transform_indices = @transform_6, window_bounds = array<i64: 1, 128>}, {pipeline_mode = #tpu.pipeline_mode<synchronous>, transform_indices = @transform_7, window_bounds = array<i64: 128, 32>}, {pipeline_mode = #tpu.pipeline_mode<synchronous>, transform_indices = @transform_8, window_bounds = array<i64: 1, 32>}, {transform_indices = @transform_9, window_bounds = array<i64: 1, 1, 32>}]} {
    %c0_i32 = arith.constant 0 : i32
    %0 = arith.cmpi eq, %arg1, %c0_i32 : i32
    %1 = arith.extui %0 : i1 to i32
    %c0_i32_0 = arith.constant 0 : i32
    %2 = arith.cmpi ne, %1, %c0_i32_0 : i32
    scf.if %2 {
      %cst_27 = arith.constant 0xFF800000 : f32
      %50 = vector.broadcast %cst_27 : f32 to vector<8x128xf32>
      %c0_28 = arith.constant 0 : index
      %c0_29 = arith.constant 0 : index
      %51 = vector.load %arg12[%c0_28, %c0_29] : memref<8x128xf32, #tpu.memory_space<vmem>>, vector<8x128xf32>
      tpu.vector_store %arg12[%c0_28, %c0_29], %50 {strides = array<i32>} : memref<8x128xf32, #tpu.memory_space<vmem>>, vector<8x128xf32>,
    } else {
    }
    %c0 = arith.constant 0 : index
    %c0_1 = arith.constant 0 : index
    %c0_2 = arith.constant 0 : index
    %3 = vector.load %arg2[%c0, %c0_1, %c0_2] : memref<1x128x3xf32, #tpu.memory_space<vmem>>, vector<1x128x3xf32>
    %4 = vector.shape_cast %3 : vector<1x128x3xf32> to vector<128x3xf32>
    %c0_3 = arith.constant 0 : index
    %c0_4 = arith.constant 0 : index
    %5 = vector.load %arg4[%c0_3, %c0_4] : memref<1x64xf32, #tpu.memory_space<vmem>>, vector<1x64xf32>
    %6 = vector.shape_cast %5 : vector<1x64xf32> to vector<1x64xf32>
    %7 = vector.broadcast %6 : vector<1x64xf32> to vector<128x64xf32>
    %8 = vector.extract_strided_slice %4 {offsets = [0, 0], sizes = [128, 1], strides = [1, 1]} : vector<128x3xf32> to vector<128x1xf32>
    %c0_5 = arith.constant 0 : index
    %c0_6 = arith.constant 0 : index
    %9 = vector.load %arg3[%c0_5, %c0_6] : memref<3x64xf32, #tpu.memory_space<vmem>>, vector<1x64xf32>
    %10 = vector.broadcast %8 : vector<128x1xf32> to vector<128x64xf32>
    %11 = vector.broadcast %9 : vector<1x64xf32> to vector<128x64xf32>
    %12 = arith.mulf %10, %11 : vector<128x64xf32>
    %13 = arith.addf %7, %12 : vector<128x64xf32>
    %14 = vector.extract_strided_slice %4 {offsets = [0, 1], sizes = [128, 1], strides = [1, 1]} : vector<128x3xf32> to vector<128x1xf32>
    %c1 = arith.constant 1 : index
    %c0_7 = arith.constant 0 : index
    %15 = vector.load %arg3[%c1, %c0_7] : memref<3x64xf32, #tpu.memory_space<vmem>>, vector<1x64xf32>
    %16 = vector.broadcast %14 : vector<128x1xf32> to vector<128x64xf32>
    %17 = vector.broadcast %15 : vector<1x64xf32> to vector<128x64xf32>
    %18 = arith.mulf %16, %17 : vector<128x64xf32>
    %19 = arith.addf %13, %18 : vector<128x64xf32>
    %20 = vector.extract_strided_slice %4 {offsets = [0, 2], sizes = [128, 1], strides = [1, 1]} : vector<128x3xf32> to vector<128x1xf32>
    %c2 = arith.constant 2 : index
    %c0_8 = arith.constant 0 : index
    %21 = vector.load %arg3[%c2, %c0_8] : memref<3x64xf32, #tpu.memory_space<vmem>>, vector<1x64xf32>
    %22 = vector.broadcast %20 : vector<128x1xf32> to vector<128x64xf32>
    %23 = vector.broadcast %21 : vector<1x64xf32> to vector<128x64xf32>
    %24 = arith.mulf %22, %23 : vector<128x64xf32>
    %25 = arith.addf %19, %24 : vector<128x64xf32>
    %cst = arith.constant 0.000000e+00 : f32
    %26 = vector.broadcast %cst : f32 to vector<128x64xf32>
    %27 = arith.maximumf %25, %26 : vector<128x64xf32>
    %28 = arith.truncf %27 : vector<128x64xf32> to vector<128x64xbf16>
    %c0_9 = arith.constant 0 : index
    %c0_10 = arith.constant 0 : index
    %29 = vector.load %arg5[%c0_9, %c0_10] : memref<64x128xbf16, #tpu.memory_space<vmem>>, vector<64x128xbf16>
    %cst_11 = arith.constant dense<0.000000e+00> : vector<128x128xf32>
    %30 = tpu.matmul %28, %29, %cst_11 {dimension_numbers = #tpu.dot_dimension_numbers<[1], [0], [0], [1], [0, 0, 1, 1], [], []>} : vector<128x64xbf16>, vector<64x128xbf16>, vector<128x128xf32> -> vector<128x128xf32>
    %c0_12 = arith.constant 0 : index
    %c0_13 = arith.constant 0 : index
    %31 = vector.load %arg6[%c0_12, %c0_13] : memref<1x128xf32, #tpu.memory_space<vmem>>, vector<1x128xf32>
    %32 = vector.broadcast %31 : vector<1x128xf32> to vector<128x128xf32>
    %33 = arith.addf %30, %32 : vector<128x128xf32>
    %cst_14 = arith.constant 0.000000e+00 : f32
    %34 = vector.broadcast %cst_14 : f32 to vector<128x128xf32>
    %35 = arith.maximumf %33, %34 : vector<128x128xf32>
    %36 = arith.truncf %35 : vector<128x128xf32> to vector<128x128xbf16>
    %c0_15 = arith.constant 0 : index
    %c0_16 = arith.constant 0 : index
    %37 = vector.load %arg7[%c0_15, %c0_16] : memref<128x128xbf16, #tpu.memory_space<vmem>>, vector<128x128xbf16>
    %cst_17 = arith.constant dense<0.000000e+00> : vector<128x128xf32>
    %38 = tpu.matmul %36, %37, %cst_17 {dimension_numbers = #tpu.dot_dimension_numbers<[1], [0], [0], [1], [0, 0, 1, 1], [], []>} : vector<128x128xbf16>, vector<128x128xbf16>, vector<128x128xf32> -> vector<128x128xf32>
    %c0_18 = arith.constant 0 : index
    %c0_19 = arith.constant 0 : index
    %39 = vector.load %arg8[%c0_18, %c0_19] : memref<1x128xf32, #tpu.memory_space<vmem>>, vector<1x128xf32>
    %40 = vector.broadcast %39 : vector<1x128xf32> to vector<128x128xf32>
    %41 = arith.addf %38, %40 : vector<128x128xf32>
    %42 = vector.shape_cast %41 : vector<128x128xf32> to vector<16x8x128xf32>
    %cst_20 = arith.constant dense<0xFF800000> : vector<8x128xf32>
    %43 = vector.multi_reduction <maximumf>, %42, %cst_20 [0] : vector<16x8x128xf32> to vector<8x128xf32>
    %c0_21 = arith.constant 0 : index
    %c0_22 = arith.constant 0 : index
    %44 = vector.load %arg12[%c0_21, %c0_22] : memref<8x128xf32, #tpu.memory_space<vmem>>, vector<8x128xf32>
    %45 = arith.maximumf %44, %43 : vector<8x128xf32>
    %c0_23 = arith.constant 0 : index
    %c0_24 = arith.constant 0 : index
    %46 = vector.load %arg12[%c0_23, %c0_24] : memref<8x128xf32, #tpu.memory_space<vmem>>, vector<8x128xf32>
    tpu.vector_store %arg12[%c0_23, %c0_24], %45 {strides = array<i32>} : memref<8x128xf32, #tpu.memory_space<vmem>>, vector<8x128xf32>,
    %c0_i32_25 = arith.constant 0 : i32
    %47 = arith.cmpi eq, %arg1, %c0_i32_25 : i32
    %48 = arith.extui %47 : i1 to i32
    %c0_i32_26 = arith.constant 0 : i32
    %49 = arith.cmpi ne, %48, %c0_i32_26 : i32
    scf.if %49 {
      %c0_27 = arith.constant 0 : index
      %c0_28 = arith.constant 0 : index
      %50 = vector.load %arg12[%c0_27, %c0_28] : memref<8x128xf32, #tpu.memory_space<vmem>>, vector<8x128xf32>
      %cst_29 = arith.constant dense<0xFF800000> : vector<128xf32>
      %51 = vector.multi_reduction <maximumf>, %50, %cst_29 [0] : vector<8x128xf32> to vector<128xf32>
      %52 = vector.shape_cast %51 : vector<128xf32> to vector<1x128xf32>
      %53 = arith.truncf %52 : vector<1x128xf32> to vector<1x128xbf16>
      %c0_30 = arith.constant 0 : index
      %c0_31 = arith.constant 0 : index
      %54 = vector.load %arg9[%c0_30, %c0_31] : memref<128x32xbf16, #tpu.memory_space<vmem>>, vector<128x32xbf16>
      %cst_32 = arith.constant dense<0.000000e+00> : vector<1x32xf32>
      %55 = tpu.matmul %53, %54, %cst_32 {dimension_numbers = #tpu.dot_dimension_numbers<[1], [0], [0], [1], [0, 0, 1, 1], [], []>} : vector<1x128xbf16>, vector<128x32xbf16>, vector<1x32xf32> -> vector<1x32xf32>
      %c0_33 = arith.constant 0 : index
      %c0_34 = arith.constant 0 : index
      %56 = vector.load %arg10[%c0_33, %c0_34] : memref<1x32xf32, #tpu.memory_space<vmem>>, vector<1x32xf32>
      %57 = arith.addf %55, %56 : vector<1x32xf32>
      %c0_35 = arith.constant 0 : index
      %c0_36 = arith.constant 0 : index
      %c0_37 = arith.constant 0 : index
      %58 = vector.load %arg11[%c0_35, %c0_36, %c0_37] : memref<1x1x32xf32, #tpu.memory_space<vmem>>, vector<1x1x32xf32>
      %59 = vector.shape_cast %58 : vector<1x1x32xf32> to vector<1x32xf32>
      %60 = vector.shape_cast %57 : vector<1x32xf32> to vector<1x1x32xf32>
      tpu.vector_store %arg11[%c0_35, %c0_36, %c0_37], %60 {strides = array<i32>} : memref<1x1x32xf32, #tpu.memory_space<vmem>>, vector<1x1x32xf32>,
    } else {
    }
    return
  }
  func.func @transform_0(%arg0: i32, %arg1: i32) -> (i32, i32, i32) {
    %c0_i32 = arith.constant 0 : i32
    %c0_i32_0 = arith.constant 0 : i32
    return %arg0, %arg1, %c0_i32 : i32, i32, i32
  }
  func.func @transform_1(%arg0: i32, %arg1: i32) -> (i32, i32) {
    %c0_i32 = arith.constant 0 : i32
    %c0_i32_0 = arith.constant 0 : i32
    %c0_i32_1 = arith.constant 0 : i32
    return %c0_i32, %c0_i32_0 : i32, i32
  }
  func.func @transform_2(%arg0: i32, %arg1: i32) -> (i32, i32) {
    %c0_i32 = arith.constant 0 : i32
    %c0_i32_0 = arith.constant 0 : i32
    %c0_i32_1 = arith.constant 0 : i32
    return %c0_i32, %c0_i32_0 : i32, i32
  }
  func.func @transform_3(%arg0: i32, %arg1: i32) -> (i32, i32) {
    %c0_i32 = arith.constant 0 : i32
    %c0_i32_0 = arith.constant 0 : i32
    %c0_i32_1 = arith.constant 0 : i32
    return %c0_i32, %c0_i32_0 : i32, i32
  }
  func.func @transform_4(%arg0: i32, %arg1: i32) -> (i32, i32) {
    %c0_i32 = arith.constant 0 : i32
    %c0_i32_0 = arith.constant 0 : i32
    %c0_i32_1 = arith.constant 0 : i32
    return %c0_i32, %c0_i32_0 : i32, i32
  }
  func.func @transform_5(%arg0: i32, %arg1: i32) -> (i32, i32) {
    %c0_i32 = arith.constant 0 : i32
    %c0_i32_0 = arith.constant 0 : i32
    %c0_i32_1 = arith.constant 0 : i32
    return %c0_i32, %c0_i32_0 : i32, i32
  }
  func.func @transform_6(%arg0: i32, %arg1: i32) -> (i32, i32) {
    %c0_i32 = arith.constant 0 : i32
    %c0_i32_0 = arith.constant 0 : i32
    %c0_i32_1 = arith.constant 0 : i32
    return %c0_i32, %c0_i32_0 : i32, i32
  }
  func.func @transform_7(%arg0: i32, %arg1: i32) -> (i32, i32) {
    %c0_i32 = arith.constant 0 : i32
    %c0_i32_0 = arith.constant 0 : i32
    %c0_i32_1 = arith.constant 0 : i32
    return %c0_i32, %c0_i32_0 : i32, i32
  }
  func.func @transform_8(%arg0: i32, %arg1: i32) -> (i32, i32) {
    %c0_i32 = arith.constant 0 : i32
    %c0_i32_0 = arith.constant 0 : i32
    %c0_i32_1 = arith.constant 0 : i32
    return %c0_i32, %c0_i32_0 : i32, i32
  }
  func.func @transform_9(%arg0: i32, %arg1: i32) -> (i32, i32, i32) {
    %c0_i32 = arith.constant 0 : i32
    %c0_i32_0 = arith.constant 0 : i32
    %c0_i32_1 = arith.constant 0 : i32
    return %arg0, %c0_i32, %c0_i32_0 : i32, i32, i32
  }
}

</mosaic_0001>

<bundles_post_ra>
// kernel: tpu_custom_call.1
= control target key start
LH: loop header
LB: loop body
LE: loop exit
PB: predicated region body
PF: predicated region fallthrough
CT: control target
= control target key end

     0   :  { %s1864_s0 = inlined_call_operand.vmem [shape: f32[2,128,3], index: 0, kind: input, shape index: {}]   ;;  %s1865_s1 = inlined_call_operand.vmem [shape: f32[3,64], index: 1, kind: input, shape index: {}]   ;;  %s1866_s2 = inlined_call_operand.vmem [shape: f32[1,64], index: 2, kind: input, shape index: {}]   ;;  %s1867_s3 = inlined_call_operand.vmem [shape: bf16[64,128], index: 3, kind: input, shape index: {}]   ;;  %s1868_s4 = inlined_call_operand.vmem [shape: f32[1,128], index: 4, kind: input, shape index: {}]   ;;  %s1869_s5 = inlined_call_operand.vmem [shape: bf16[128,128], index: 5, kind: input, shape index: {}]   ;;  %s1870_s6 = inlined_call_operand.vmem [shape: f32[1,128], index: 6, kind: input, shape index: {}]   ;;  %s1871_s7 = inlined_call_operand.vmem [shape: bf16[128,32], index: 7, kind: input, shape index: {}]   ;;  %s1872_s8 = inlined_call_operand.vmem [shape: f32[1,32], index: 8, kind: input, shape index: {}]   ;;  %s1873_s9 = inlined_call_operand.hbm [shape: f32[2,1,32], index: 9, kind: output, shape index: {}]  }
   0x1   :  { %1874 = sst [smem:[#allocation6_spill]] %s1864_s0 }
   0x2   :  { %14 = vsyncpa [#allocation4], 0 }
   0x3   :  { %16 = vsyncpa [#allocation4 + $0x1], 0  ;;  %s1526_s30 = smov 0   ;;  %s1528_s10 = smov 0  }
   0x4   :  { %s1530_s11 = smov 0   ;;  %s1532_s12 = smov 0  }
   0x5   :  { %s1534_s13 = smov 0   ;;  %s1536_s14 = smov 0  }
   0x6 LB: > { %s1160_s15 = sadd.s32 4294967295, %s1471_s14   ;;  %s1161_s16 = sadd.s32 4294967294, %s1471_s14   ;;  %s1471_s14 = sphi %s1536_s14, %s22_s14   ;;  %s1467_s13 = sphi %s1534_s13, %s1882_s13   ;;  %s1463_s12 = sphi %s1532_s12, %s1881_s12   ;;  %s1459_s11 = sphi %s1530_s11, %s1880_s11   ;;  %s1455_s10 = sphi %s1528_s10, %s1879_s10   ;;  %s1451_s30 = sphi %s1526_s30, %s1878_s30  }
   0x7   : > { %s34_s17 = sadd.s32 1, %s1467_s13  ;;  %s237_s18 = sadd.s32 1, %s1459_s11 }
   0x8   : > { %p36_p0 = scmp.ge.s32.totalorder %s34_s17, 2  ;;  %p247_p1 = scmp.ne.s32.totalorder %s1459_s11, %s1455_s10 }
   0x9   : > { %p248_p2 = scmp.eq.s32.totalorder %s1160_s15, 1  ;;  %p253_p3 = scmp.ne.s32.totalorder %s1455_s10, %s1451_s30 }
   0xa   : > { %s1884_s17 = smov (%p36_p0, %s34_s17), 0  ;;  %p254_p5 = scmp.eq.s32.totalorder %s1161_s16, 1 }
   0xb   : > { %p1566_p4 = por %p248_p2, %p247_p1  ;;  %s234_s20 = ssub.s32 %s1467_s13, %s1884_s17 }
   0xc   : > { %p1164_p6 = scmp.ge.s32.totalorder %s1471_s14, 1  ;;  %p235_p7 = scmp.eq.s32.totalorder %s234_s20, 0 }
   0xd   : > { %p1573_p8 = por %p254_p5, %p253_p3  ;;  %p309_p9 = scmp.lt.s32.totalorder %s1471_s14, 3 }
   0xe   : > { %s1579_s22 = scalar_select %p235_p7, %s1459_s11, %s237_s18  }
   0xf   : > { %p310_p10 = pnand %p1164_p6, %p309_p9 }
  0x10   : > { %p349_p11 = scmp.lt.s32.totalorder (!%p310_p10), %s1463_s12, 1  ;;  %s1877_s0 = sld [smem:[#allocation6_spill]] (!%p310_p10) }
  0x11   : > { %313 = sbr.rel (%p310_p10) target bundleno = 750 (0x2ee), region = 56  ;;  %s346_s25 = sand.u32 (!%p310_p10), 1, %s1455_s10  }
  0x12   : > { %s1087_s29 = scalar_lea.hbm (!%p310_p10), %s1873_s9, %s1463_s12  ;;  %s347_s18 = scalar_lea.vmem (!%p310_p10), [#allocation3], %s346_s25 }
  0x13   : > { %s1089_s20 = sshll.u32 (!%p310_p10), %s347_s18, 4  ;;  %s1413_s28 = scalar_lea.hbm (!%p310_p10), %s1873_s9, 2  ;;  %s1090_s20 = int_to_ptr.vmem [resolvable:$true] %s1089_s20 }
  0x16   : > { %v1473_v0 = vmov 1   ;;  %v1474_v1 = vmov 0   ;;  %s350_s23 = scalar_select %p349_p11, %s1463_s12, 1  ;;  %v1475_v2 = vmov 2   ;;  %v1261_v16 = vld [vmem:[%s1867_s3 + $0x18] sm:$0xff]  ;;  %v1260_v17 = vld [vmem:[%s1867_s3 + $0x10] sm:$0xff] }
  0x17   : > { %1349 = vset.pattern.permute.xlu1 %v1473_v0  ;;  %1348 = vset.pattern.permute.xlu0 %v1474_v1  ;;  %v1259_v19 = vld [vmem:[%s1867_s3 + $0x8] sm:$0xff]  ;;  %v1258_v21 = vld [vmem:[%s1867_s3] sm:$0xff]  ;;  %vm754_vm0 = vcmask 523264   ;;  %vm1076_vm1 = vcmask 253952  }
  0x18   : > { %1350 = vset.pattern.permute.xlu2 %v1475_v2  ;;  %s1257_s24 = sshll.u32 %s350_s23, 7  ;;  %783 = vmatpush.bf16.msra.mxu0 %v1261_v16  ;;  %v1651_v24 = vld [vmem:[%s1865_s1] ss:$0 sm:$0xff]  ;;  %v1664_v29 = vld [vmem:[%s1865_s1 + $0x1] ss:$0 sm:$0xff]  ;;  %s1079_s23 = scalar_lea.sflag [#allocation4], %s346_s25 }
  0x19   : > { %s1589_s27 = scalar_lea.vmem %s1877_s0, %s1257_s24  ;;  %1278 = vmatpush.bf16.msra.mxu2 %v1261_v16  ;;  %v1656_v27 = vld [vmem:[%s1866_s2] ss:$0 sm:$0xff]  ;;  %v1669_v31 = vld [vmem:[%s1865_s1 + $0x2] ss:$0 sm:$0xff] }
  0x1a   : > { %v364_v3 = vld [vmem:[%s1589_s27] sm:$0xff]  ;;  %v365_v4 = vld [vmem:[%s1589_s27 + $0x8] sm:$0xff]  ;;  %v366_v5 = vld [vmem:[%s1589_s27 + $0x10] sm:$0xff] }
  0x1b   : > { %500 = vperm.xlu1 %1349, %v364_v3   ;;  %387 = vperm.xlu0 %1348, %v364_v3   ;;  %v367_v6 = vld [vmem:[%s1589_s27 + $0x18] sm:$0xff]  ;;  %v368_v7 = vld [vmem:[%s1589_s27 + $0x20] sm:$0xff]  ;;  %v369_v8 = vld [vmem:[%s1589_s27 + $0x28] sm:$0xff] }
  0x1c   : > { %598 = vperm.xlu2 %1350, %v364_v3   ;;  %v370_v9 = vld [vmem:[%s1589_s27 + $0x30] sm:$0xff]  ;;  %v371_v10 = vld [vmem:[%s1589_s27 + $0x38] sm:$0xff]  ;;  %v373_v11 = vld [vmem:[%s1589_s27 + $0x48] sm:$0xff]  ;;  %784 = vmatpush.bf16.msra.mxu0 %v1260_v17 }
  0x1d   : > { %v374_v12 = vld [vmem:[%s1589_s27 + $0x50] sm:$0xff]  ;;  %v372_v13 = vld [vmem:[%s1589_s27 + $0x40] sm:$0xff]  ;;  %v375_v14 = vld [vmem:[%s1589_s27 + $0x58] sm:$0xff]  ;;  %1279 = vmatpush.bf16.msra.mxu2 %v1260_v17 }
  0x1e   : > { %v376_v15 = vld [vmem:[%s1589_s27 + $0x60] sm:$0xff]  ;;  %v377_v18 = vld [vmem:[%s1589_s27 + $0x68] sm:$0xff]  ;;  %v1643_v22 = vld [vmem:[%s1589_s27 + $0x70] sm:$0xff] }
  0x1f   : > { %v379_v52 = vld [vmem:[%s1589_s27 + $0x78] sm:$0xff]  ;;  %s1091_s27 = sshll.u32 %s1087_s29, 4  ;;  %s1092_s27 = int_to_ptr.hbm [resolvable:$true] %s1091_s27 }
  0x20   : > { %785 = vmatpush.bf16.msra.mxu0 %v1259_v19  ;;  %s1407_s24 = sshra.s32 %s1092_s27, 4  ;;  %s1408_s24 = int_to_ptr.hbm [resolvable:$true] %s1407_s24 }
  0x21   : > { %1280 = vmatpush.bf16.msra.mxu2 %v1259_v19  ;;  %s1409_s0 = scalar_lea.hbm %s1408_s24, 1  ;;  %p1414_p1 = scmp.lt.s32.totalorder %s1408_s24, %s1873_s9 }
  0x22   : > { %p1410_p12 = scmp.ne.s32.totalorder %s1408_s24, %s1409_s0  ;;  %p1415_p2 = scmp.lt.s32.totalorder %s1413_s28, %s1409_s0 }
  0x23   : > { %504 = vperm.xlu1 %1349, %v365_v4   ;;  %392 = vperm.xlu0 %1348, %v365_v4  }
  0x24   : > { %602 = vperm.xlu2 %1350, %v365_v4   ;;  %786 = vmatpush.bf16.msra.mxu0 %v1258_v21  ;;  %p1411_p13 = pnand %p1410_p12, %p1566_p4  ;;  %p1416_p3 = por %p1415_p2, %p1414_p1 }
  0x25   : > { %1281 = vmatpush.bf16.msra.mxu2 %v1258_v21 }
  0x26   : > { %p1412_p0 = pneg %p1411_p13 }
  0x28   : > { %p1417_p5 = pnand %p1416_p3, %p1412_p0 }
  0x2b   : > { %1351 = vset.pattern.permute.xlu1 %v1474_v1  ;;  %397 = vperm.xlu0 %1348, %v366_v5  }
  0x2c   : > { %402 = vperm.xlu1 %1351, %v367_v6   ;;  %1352 = vset.pattern.permute.xlu2 %v1473_v0 }
  0x2d   : > { %508 = vperm.xlu2 %1352, %v366_v5  }
  0x33   : > { %1353 = vset.pattern.permute.xlu0 %v1473_v0 }
  0x34   : > { %1354 = vset.pattern.permute.xlu1 %v1475_v2  ;;  %512 = vperm.xlu0 %1353, %v367_v6  }
  0x35   : > { %606 = vperm.xlu1 %1354, %v366_v5   ;;  %1355 = vset.pattern.permute.xlu2 %v1475_v2 }
  0x36   : > { %610 = vperm.xlu2 %1355, %v367_v6  }
  0x3c   : > { %516 = vperm.xlu0 %1353, %v368_v7  }
  0x3d   : > { %1356 = vset.pattern.permute.xlu1 %v1474_v1 }
  0x3e   : > { %407 = vperm.xlu1 %1356, %v368_v7   ;;  %1357 = vset.pattern.permute.xlu2 %v1474_v1 }
  0x3f   : > { %412 = vperm.xlu2 %1357, %v369_v8  }
  0x44   : > { %1360 = vset.pattern.permute.xlu0 %v1475_v2 }
  0x45   : > { %618 = vperm.xlu0 %1360, %v369_v8  }
  0x46   : > { %1358 = vset.pattern.permute.xlu1 %v1473_v0 }
  0x47   : > { %520 = vperm.xlu1 %1358, %v369_v8   ;;  %1359 = vset.pattern.permute.xlu2 %v1475_v2 }
  0x48   : > { %614 = vperm.xlu2 %1359, %v368_v7  }
  0x4d   : > { %622 = vperm.xlu0 %1360, %v370_v9  }
  0x4f   : > { %1361 = vset.pattern.permute.xlu1 %v1474_v1 }
  0x50   : > { %417 = vperm.xlu1 %1361, %v370_v9   ;;  %1362 = vset.pattern.permute.xlu2 %v1474_v1 }
  0x51   : > { %422 = vperm.xlu2 %1362, %v371_v10  }
  0x55   : > { %1367 = vset.pattern.permute.xlu0 %v1474_v1 }
  0x56   : > { %432 = vperm.xlu0 %1367, %v373_v11  }
  0x58   : > { %1363 = vset.pattern.permute.xlu1 %v1473_v0 }
  0x59   : > { %524 = vperm.xlu1 %1363, %v370_v9   ;;  %1364 = vset.pattern.permute.xlu2 %v1473_v0 }
  0x5a   : > { %528 = vperm.xlu2 %1364, %v371_v10  }
  0x5e   : > { %437 = vperm.xlu0 %1367, %v374_v12  }
  0x61   : > { %1365 = vset.pattern.permute.xlu1 %v1475_v2 }
  0x62   : > { %626 = vperm.xlu1 %1365, %v371_v10   ;;  %1366 = vset.pattern.permute.xlu2 %v1474_v1 }
  0x63   : > { %427 = vperm.xlu2 %1366, %v372_v13  }
  0x66   : > { %1374 = vset.pattern.permute.xlu0 %v1473_v0 }
  0x67   : > { %544 = vperm.xlu0 %1374, %v375_v14  }
  0x6a   : > { %1368 = vset.pattern.permute.xlu1 %v1473_v0 }
  0x6b   : > { %532 = vperm.xlu1 %1368, %v372_v13   ;;  %1369 = vset.pattern.permute.xlu2 %v1473_v0 }
  0x6c   : > { %536 = vperm.xlu2 %1369, %v373_v11  }
  0x6f   : > { %548 = vperm.xlu0 %1374, %v376_v15  }
  0x73   : > { %1370 = vset.pattern.permute.xlu1 %v1475_v2 }
  0x74   : > { %630 = vperm.xlu1 %1370, %v372_v13   ;;  %1371 = vset.pattern.permute.xlu2 %v1475_v2 }
  0x75   : > { %634 = vperm.xlu2 %1371, %v373_v11  }
  0x76   : > { %v599_v20 = vpop.permute.xlu2 %598 }
  0x77   : > { %1381 = vset.pattern.permute.xlu0 %v1475_v2  ;;  %v662_v36 = vmul.f32 %v1669_v31, %v599_v20 }
  0x78   : > { %650 = vperm.xlu0 %1381, %v377_v18  }
  0x7c   : > { %1372 = vset.pattern.permute.xlu1 %v1474_v1 }
  0x7d   : > { %442 = vperm.xlu1 %1372, %v375_v14   ;;  %1373 = vset.pattern.permute.xlu2 %v1473_v0 }
  0x7e   : > { %540 = vperm.xlu2 %1373, %v374_v12   ;;  %v603_v23 = vpop.permute.xlu2 %602 }
  0x7f   : > { %v663_v41 = vmul.f32 %v1669_v31, %v603_v23 }
  0x80   : > { %654 = vperm.xlu0 %1381, %v1643_v22  }
  0x85   : > { %1375 = vset.pattern.permute.xlu1 %v1475_v2 }
  0x86   : > { %638 = vperm.xlu1 %1375, %v374_v12   ;;  %1376 = vset.pattern.permute.xlu2 %v1475_v2 }
  0x87   : > { %642 = vperm.xlu2 %1376, %v375_v14   ;;  %v509_v30 = vpop.permute.xlu2 %508 }
  0x88   : > { %v566_v53 = vmul.f32 %v1664_v29, %v509_v30 }
  0x8d   : > { %v501_v25 = vpop.permute.xlu1 %500  ;;  %v388_v26 = vpop.permute.xlu0 %387 }
  0x8e   : > { %v466_v28 = vmul.f32 %v1651_v24, %v388_v26  ;;  %1377 = vset.pattern.permute.xlu1 %v1474_v1  ;;  %v564_v33 = vmul.f32 %v1664_v29, %v501_v25 }
  0x8f   : > { %447 = vperm.xlu1 %1377, %v376_v15   ;;  %1378 = vset.pattern.permute.xlu2 %v1474_v1 }
  0x90   : > { %452 = vperm.xlu2 %1378, %v377_v18   ;;  %v482_v32 = vadd.f32 %v1656_v27, %v466_v28  ;;  %v611_v44 = vpop.permute.xlu2 %610 }
  0x91   : > { %v665_v60 = vmul.f32 %v1669_v31, %v611_v44 }
  0x92   : > { %v580_v37 = vadd.f32 %v564_v33, %v482_v32 }
  0x94   : > { %v678_v43 = vadd.f32 %v662_v36, %v580_v37 }
  0x95   : > { %v505_v34 = vpop.permute.xlu1 %504  ;;  %v393_v35 = vpop.permute.xlu0 %392 }
  0x96   : > { %v467_v38 = vmul.f32 %v1651_v24, %v393_v35  ;;  %v565_v39 = vmul.f32 %v1664_v29, %v505_v34  ;;  %v694_v49 = vmax.f32 %v678_v43, 0.0 }
  0x97   : > { %1379 = vset.pattern.permute.xlu1 %v1473_v0 }
  0x98   : > { %v483_v40 = vadd.f32 %v1656_v27, %v467_v38  ;;  %552 = vperm.xlu1 %1379, %v377_v18   ;;  %1380 = vset.pattern.permute.xlu2 %v1475_v2 }
  0x99   : > { %646 = vperm.xlu2 %1380, %v376_v15   ;;  %v413_v56 = vpop.permute.xlu2 %412 }
  0x9a   : > { %v581_v42 = vadd.f32 %v565_v39, %v483_v40  ;;  %v471_v12 = vmul.f32 %v1651_v24, %v413_v56 }
  0x9c   : > { %v679_v45 = vadd.f32 %v663_v41, %v581_v42  ;;  %v487_v16 = vadd.f32 %v1656_v27, %v471_v12  ;;  %v1269_v12 = vld [vmem:[%s1869_s5 + $0x38] sm:$0xff] }
  0x9d   : > { %v398_v46 = vpop.permute.xlu0 %397  ;;  %920 = vmatpush.bf16.msra.mxu1 %v1269_v12  ;;  %1282 = vmatpush.bf16.msra.mxu3 %v1269_v12 }
  0x9e   : > { %v403_v47 = vpop.permute.xlu1 %402  ;;  %v468_v48 = vmul.f32 %v1651_v24, %v398_v46  ;;  %v695_v50 = vmax.f32 %v679_v45, 0.0 }
  0x9f   : > { %v469_v55 = vmul.f32 %v1651_v24, %v403_v47 }
  0xa0   : > { %1382 = vset.pattern.permute.xlu1 %v1474_v1  ;;  %v710_v51 = vpack.c.bf16 %v695_v50, %v694_v49  ;;  %v484_v54 = vadd.f32 %v1656_v27, %v468_v48 }
  0xa1   : > { %457 = vperm.xlu1 %1382, %v1643_v22   ;;  %1383 = vset.pattern.permute.xlu2 %v1474_v1  ;;  %v485_v59 = vadd.f32 %v1656_v27, %v469_v55 }
  0xa2   : > { %1183 = vmatmul.msk.bf16.vlgmr.msra.gmra.mxu0 %vm754_vm0, %v710_v51  ;;  %462 = vperm.xlu2 %1383, %v379_v52   ;;  %v582_v58 = vadd.f32 %v566_v53, %v484_v54  ;;  %v615_v8 = vpop.permute.xlu2 %614 }
  0xa3   : > { %v666_v18 = vmul.f32 %v1669_v31, %v615_v8 }
  0xa6   : > { %v513_v57 = vpop.permute.xlu0 %512 }
  0xa7   : > { %v567_v61 = vmul.f32 %v1664_v29, %v513_v57  ;;  %v607_v62 = vpop.permute.xlu1 %606 }
  0xa8   : > { %v664_v63 = vmul.f32 %v1669_v31, %v607_v62 }
  0xa9   : > { %v583_v1 = vadd.f32 %v567_v61, %v485_v59  ;;  %1384 = vset.pattern.permute.xlu1 %v1473_v0 }
  0xaa   : > { %v680_v3 = vadd.f32 %v664_v63, %v582_v58  ;;  %556 = vperm.xlu1 %1384, %v1643_v22   ;;  %1385 = vset.pattern.permute.xlu2 %v1473_v0 }
  0xab   : > { %v681_v4 = vadd.f32 %v665_v60, %v583_v1  ;;  %560 = vperm.xlu2 %1385, %v379_v52   ;;  %v423_v14 = vpop.permute.xlu2 %422 }
  0xac   : > { %v696_v5 = vmax.f32 %v680_v3, 0.0  ;;  %v473_v36 = vmul.f32 %v1651_v24, %v423_v14 }
  0xad   : > { %v697_v6 = vmax.f32 %v681_v4, 0.0 }
  0xae   : > { %v517_v7 = vpop.permute.xlu0 %516  ;;  %v489_v40 = vadd.f32 %v1656_v27, %v473_v36 }
  0xaf   : > { %v711_v9 = vpack.c.bf16 %v697_v6, %v696_v5  ;;  %v568_v0 = vmul.f32 %v1664_v29, %v517_v7 }
  0xb0   : > { %v408_v10 = vpop.permute.xlu1 %407 }
  0xb1   : > { %v470_v11 = vmul.f32 %v1651_v24, %v408_v10 }
  0xb2   : > { %1386 = vset.pattern.permute.xlu1 %v1475_v2  ;;  %1184 = vmatmul.msk.bf16.gmra.mxu0 %vm754_vm0, %v711_v9 }
  0xb3   : > { %658 = vperm.xlu1 %1386, %v379_v52   ;;  %v486_v13 = vadd.f32 %v1656_v27, %v470_v11 }
  0xb4   : > { %v529_v28 = vpop.permute.xlu2 %528 }
  0xb5   : > { %v584_v17 = vadd.f32 %v568_v0, %v486_v13  ;;  %v571_v41 = vmul.f32 %v1664_v29, %v529_v28 }
  0xb7   : > { %v619_v15 = vpop.permute.xlu0 %618  ;;  %v682_v21 = vadd.f32 %v666_v18, %v584_v17  ;;  %v587_v46 = vadd.f32 %v571_v41, %v489_v40  ;;  %v1268_v17 = vld [vmem:[%s1869_s5 + $0x30] sm:$0xff] }
  0xb8   : > { %v667_v2 = vmul.f32 %v1669_v31, %v619_v15  ;;  %921 = vmatpush.bf16.msra.mxu1 %v1268_v17  ;;  %1283 = vmatpush.bf16.msra.mxu3 %v1268_v17  ;;  %v1264_v41 = vld [vmem:[%s1869_s5 + $0x10] sm:$0xff] }
  0xb9   : > { %v521_v19 = vpop.permute.xlu1 %520  ;;  %v698_v25 = vmax.f32 %v682_v21, 0.0 }
  0xba   : > { %v569_v20 = vmul.f32 %v1664_v29, %v521_v19 }
  0xbc   : > { %v585_v22 = vadd.f32 %v569_v20, %v487_v16 }
  0xbd   : > { %v428_v33 = vpop.permute.xlu2 %427 }
  0xbe   : > { %v683_v23 = vadd.f32 %v667_v2, %v585_v22  ;;  %v474_v59 = vmul.f32 %v1651_v24, %v428_v33 }
  0xbf   : > { %v623_v38 = vpop.permute.xlu0 %622 }
  0xc0   : > { %v699_v26 = vmax.f32 %v683_v23, 0.0  ;;  %v668_v43 = vmul.f32 %v1669_v31, %v623_v38  ;;  %v490_v62 = vadd.f32 %v1656_v27, %v474_v59  ;;  %v1267_v23 = vld [vmem:[%s1869_s5 + $0x28] sm:$0xff] }
  0xc1   : > { %922 = vmatpush.bf16.msra.mxu1 %v1267_v23  ;;  %1284 = vmatpush.bf16.msra.mxu3 %v1267_v23 }
  0xc2   : > { %v418_v30 = vpop.permute.xlu1 %417  ;;  %v712_v32 = vpack.c.bf16 %v699_v26, %v698_v25  ;;  %v1266_v25 = vld [vmem:[%s1869_s5 + $0x20] sm:$0xff] }
  0xc3   : > { %v472_v34 = vmul.f32 %v1651_v24, %v418_v30 }
  0xc4   : > { %1185 = vmatmul.msk.bf16.gmra.mxu0 %vm754_vm0, %v712_v32 }
  0xc5   : > { %v488_v39 = vadd.f32 %v1656_v27, %v472_v34  ;;  %923 = vmatpush.bf16.msra.mxu1 %v1266_v25  ;;  %1285 = vmatpush.bf16.msra.mxu3 %v1266_v25 }
  0xc6   : > { %v537_v45 = vpop.permute.xlu2 %536 }
  0xc7   : > { %v573_v55 = vmul.f32 %v1664_v29, %v537_v45 }
  0xc8   : > { %v433_v49 = vpop.permute.xlu0 %432 }
  0xc9   : > { %v475_v53 = vmul.f32 %v1651_v24, %v433_v49 }
  0xcb   : > { %v525_v35 = vpop.permute.xlu1 %524  ;;  %v491_v57 = vadd.f32 %v1656_v27, %v475_v53 }
  0xcc   : > { %v570_v37 = vmul.f32 %v1664_v29, %v525_v35 }
  0xcd   : > { %v589_v60 = vadd.f32 %v573_v55, %v491_v57 }
  0xce   : > { %v586_v42 = vadd.f32 %v570_v37, %v488_v39  ;;  %v1265_v37 = vld [vmem:[%s1869_s5 + $0x18] sm:$0xff] }
  0xcf   : > { %v635_v58 = vpop.permute.xlu2 %634  ;;  %924 = vmatpush.bf16.msra.mxu1 %v1265_v37  ;;  %1286 = vmatpush.bf16.msra.mxu3 %v1265_v37 }
  0xd0   : > { %v684_v47 = vadd.f32 %v668_v43, %v586_v42  ;;  %v671_v61 = vmul.f32 %v1669_v31, %v635_v58  ;;  %v438_v1 = vpop.permute.xlu0 %437 }
  0xd1   : > { %v476_v15 = vmul.f32 %v1651_v24, %v438_v1 }
  0xd2   : > { %v700_v51 = vmax.f32 %v684_v47, 0.0  ;;  %v687_v3 = vadd.f32 %v671_v61, %v589_v60 }
  0xd3   : > { %v492_v20 = vadd.f32 %v1656_v27, %v476_v15  ;;  %925 = vmatpush.bf16.msra.mxu1 %v1264_v41  ;;  %1287 = vmatpush.bf16.msra.mxu3 %v1264_v41 }
  0xd4   : > { %v627_v44 = vpop.permute.xlu1 %626  ;;  %v703_v8 = vmax.f32 %v687_v3, 0.0 }
  0xd5   : > { %v669_v48 = vmul.f32 %v1669_v31, %v627_v44 }
  0xd7   : > { %v685_v50 = vadd.f32 %v669_v48, %v587_v46  ;;  %v1263_v46 = vld [vmem:[%s1869_s5 + $0x8] sm:$0xff] }
  0xd8   : > { %v541_v7 = vpop.permute.xlu2 %540  ;;  %926 = vmatpush.bf16.msra.mxu1 %v1263_v46  ;;  %1288 = vmatpush.bf16.msra.mxu3 %v1263_v46 }
  0xd9   : > { %v701_v52 = vmax.f32 %v685_v50, 0.0  ;;  %v545_v13 = vpop.permute.xlu0 %544  ;;  %v574_v2 = vmul.f32 %v1664_v29, %v541_v7 }
  0xda   : > { %v575_v16 = vmul.f32 %v1664_v29, %v545_v13  ;;  %v1776_v13 = vld [vmem:[%s1868_s4] ss:$0 sm:$0xff] }
  0xdb   : > { %v713_v54 = vpack.c.bf16 %v701_v52, %v700_v51  ;;  %v590_v28 = vadd.f32 %v574_v2, %v492_v20  ;;  %v1262_v52 = vld [vmem:[%s1869_s5] sm:$0xff] }
  0xdc   : > { %927 = vmatpush.bf16.msra.mxu1 %v1262_v52  ;;  %1289 = vmatpush.bf16.msra.mxu3 %v1262_v52 }
  0xdd   : > { %v533_v56 = vpop.permute.xlu1 %532  ;;  %1186 = vmatmul.msk.bf16.gmra.mxu0 %vm754_vm0, %v713_v54 }
  0xde   : > { %v572_v63 = vmul.f32 %v1664_v29, %v533_v56 }
  0xe0   : > { %v588_v5 = vadd.f32 %v572_v63, %v490_v62 }
  0xe1   : > { %v643_v19 = vpop.permute.xlu2 %642  ;;  %v549_v38 = vpop.permute.xlu0 %548 }
  0xe2   : > { %v673_v22 = vmul.f32 %v1669_v31, %v643_v19  ;;  %v576_v45 = vmul.f32 %v1664_v29, %v549_v38 }
  0xe6   : > { %v631_v4 = vpop.permute.xlu1 %630 }
  0xe7   : > { %v670_v6 = vmul.f32 %v1669_v31, %v631_v4 }
  0xe9   : > { %v686_v9 = vadd.f32 %v670_v6, %v588_v5 }
  0xea   : > { %v453_v34 = vpop.permute.xlu2 %452  ;;  %v651_v48 = vpop.permute.xlu0 %650 }
  0xeb   : > { %v702_v10 = vmax.f32 %v686_v9, 0.0  ;;  %v479_v43 = vmul.f32 %v1651_v24, %v453_v34  ;;  %v675_v55 = vmul.f32 %v1669_v31, %v651_v48 }
  0xed   : > { %v714_v11 = vpack.c.bf16 %v703_v8, %v702_v10  ;;  %v495_v49 = vadd.f32 %v1656_v27, %v479_v43 }
  0xef   : > { %v443_v0 = vpop.permute.xlu1 %442  ;;  %1187 = vmatmul.msk.bf16.gmra.mxu0 %vm754_vm0, %v714_v11 }
  0xf0   : > { %v477_v14 = vmul.f32 %v1651_v24, %v443_v0 }
  0xf2   : > { %v493_v18 = vadd.f32 %v1656_v27, %v477_v14  ;;  %v655_v9 = vpop.permute.xlu0 %654 }
  0xf3   : > { %v647_v47 = vpop.permute.xlu2 %646  ;;  %v676_v0 = vmul.f32 %v1669_v31, %v655_v9 }
  0xf4   : > { %v591_v21 = vadd.f32 %v575_v16, %v493_v18  ;;  %v674_v51 = vmul.f32 %v1669_v31, %v647_v47 }
  0xf6   : > { %v689_v30 = vadd.f32 %v673_v22, %v591_v21 }
  0xf8   : > { %v639_v26 = vpop.permute.xlu1 %638  ;;  %v705_v35 = vmax.f32 %v689_v30, 0.0 }
  0xf9   : > { %v672_v32 = vmul.f32 %v1669_v31, %v639_v26 }
  0xfb   : > { %v688_v33 = vadd.f32 %v672_v32, %v590_v28 }
  0xfc   : > { %v463_v63 = vpop.permute.xlu2 %462 }
  0xfd   : > { %v704_v36 = vmax.f32 %v688_v33, 0.0  ;;  %v481_v4 = vmul.f32 %v1651_v24, %v463_v63 }
  0xff   : > { %v715_v39 = vpack.c.bf16 %v705_v35, %v704_v36  ;;  %v497_v10 = vadd.f32 %v1656_v27, %v481_v4 }
 0x101   : > { %v448_v40 = vpop.permute.xlu1 %447  ;;  %1188 = vmatmul.msk.bf16.vlgmr.msra.gmra.mxu2 %vm754_vm0, %v715_v39 }
 0x102   : > { %v478_v42 = vmul.f32 %v1651_v24, %v448_v40 }
 0x104   : > { %v494_v44 = vadd.f32 %v1656_v27, %v478_v42 }
 0x105   : > { %v561_v6 = vpop.permute.xlu2 %560 }
 0x106   : > { %v592_v50 = vadd.f32 %v576_v45, %v494_v44  ;;  %v579_v11 = vmul.f32 %v1664_v29, %v561_v6 }
 0x108   : > { %v690_v56 = vadd.f32 %v674_v51, %v592_v50  ;;  %v595_v14 = vadd.f32 %v579_v11, %v497_v10 }
 0x10a   : > { %v553_v53 = vpop.permute.xlu1 %552  ;;  %v706_v59 = vmax.f32 %v690_v56, 0.0 }
 0x10b   : > { %v577_v54 = vmul.f32 %v1664_v29, %v553_v53 }
 0x10d   : > { %v593_v57 = vadd.f32 %v577_v54, %v495_v49 }
 0x10f   : > { %v691_v58 = vadd.f32 %v675_v55, %v593_v57 }
 0x111   : > { %v707_v60 = vmax.f32 %v691_v58, 0.0 }
 0x113   : > { %v458_v61 = vpop.permute.xlu1 %457  ;;  %v716_v62 = vpack.c.bf16 %v707_v60, %v706_v59 }
 0x114   : > { %v480_v1 = vmul.f32 %v1651_v24, %v458_v61 }
 0x115   : > { %1189 = vmatmul.msk.bf16.gmra.mxu2 %vm754_vm0, %v716_v62 }
 0x116   : > { %v496_v8 = vadd.f32 %v1656_v27, %v480_v1 }
 0x11c   : > { %v557_v3 = vpop.permute.xlu1 %556 }
 0x11d   : > { %v578_v5 = vmul.f32 %v1664_v29, %v557_v3 }
 0x11f   : > { %v788_v7 = vpop.f32.mrf.mxu0  ;;  %v594_v12 = vadd.f32 %v578_v5, %v496_v8 }
 0x120   : > { %v789_v16 = vadd.f32 %v1776_v13, %v788_v7 }
 0x121   : > { %v692_v15 = vadd.f32 %v676_v0, %v594_v12 }
 0x122   : > { %v828_v20 = vmax.f32 %v789_v16, 0.0 }
 0x123   : > { %v708_v29 = vmax.f32 %v692_v15, 0.0 }
 0x125   : > { %v659_v24 = vpop.permute.xlu1 %658 }
 0x126   : > { %v677_v17 = vmul.f32 %v1669_v31, %v659_v24 }
 0x127   : > { %v790_v18 = vpop.f32.mrf.mxu0 }
 0x128   : > { %v693_v19 = vadd.f32 %v677_v17, %v595_v14  ;;  %v791_v27 = vadd.f32 %v1776_v13, %v790_v18  ;;  %v1277_v18 = vld [vmem:[%s1871_s7 + $0x38] sm:$0xff] }
 0x129   : > { %1063 = vmatpush.bf16.msrb.mxu2 %v1277_v18 }
 0x12a   : > { %v709_v2 = vmax.f32 %v693_v19, 0.0  ;;  %v829_v21 = vmax.f32 %v791_v27, 0.0  ;;  %v1276_v19 = vld [vmem:[%s1871_s7 + $0x30] sm:$0xff] }
 0x12c   : > { %v717_v22 = vpack.c.bf16 %v709_v2, %v708_v29  ;;  %v844_v23 = vpack.c.bf16 %v829_v21, %v828_v20  ;;  %v1274_v20 = vld [vmem:[%s1871_s7 + $0x20] sm:$0xff]  ;;  %v1273_v21 = vld [vmem:[%s1871_s7 + $0x18] sm:$0xff] }
 0x12d   : > { %1064 = vmatpush.bf16.msrb.mxu2 %v1276_v19 }
 0x12e   : > { %1190 = vmatmul.msk.bf16.gmra.mxu2 %vm754_vm0, %v717_v22  ;;  %928 = vmatmul.bf16.vlgmr.msra.gmra.mxu1 %v844_v23 }
 0x12f   : > { %v793_v25 = vpop.f32.mrf.mxu0 }
 0x130   : > { %v794_v26 = vadd.f32 %v1776_v13, %v793_v25 }
 0x132   : > { %v830_v31 = vmax.f32 %v794_v26, 0.0  ;;  %v1272_v26 = vld [vmem:[%s1871_s7 + $0x10] sm:$0xff] }
 0x137   : > { %v795_v28 = vpop.f32.mrf.mxu0 }
 0x138   : > { %v796_v30 = vadd.f32 %v1776_v13, %v795_v28  ;;  %v1271_v28 = vld [vmem:[%s1871_s7 + $0x8] sm:$0xff] }
 0x13a   : > { %v831_v32 = vmax.f32 %v796_v30, 0.0 }
 0x13c   : > { %v845_v33 = vpack.c.bf16 %v831_v32, %v830_v31  ;;  %v1270_v31 = vld [vmem:[%s1871_s7] sm:$0xff] }
 0x13e   : > { %933 = vmatmul.bf16.gmra.mxu1 %v845_v33  ;;  %v1392_v33 = vld [vmem:[%s1870_s6] ss:$0 sm:$0xff] }
 0x141   : > { %v798_v34 = vpop.f32.mrf.mxu0 }
 0x142   : > { %v799_v35 = vadd.f32 %v1776_v13, %v798_v34 }
 0x144   : > { %v832_v38 = vmax.f32 %v799_v35, 0.0 }
 0x149   : > { %v800_v36 = vpop.f32.mrf.mxu0 }
 0x14a   : > { %v801_v37 = vadd.f32 %v1776_v13, %v800_v36 }
 0x14c   : > { %v833_v39 = vmax.f32 %v801_v37, 0.0 }
 0x14e   : > { %v846_v40 = vpack.c.bf16 %v833_v39, %v832_v38 }
 0x150   : > { %938 = vmatmul.bf16.gmra.mxu1 %v846_v40 }
 0x15a   : > { %v803_v41 = vpop.f32.mrf.mxu0 }
 0x15b   : > { %v804_v42 = vadd.f32 %v1776_v13, %v803_v41 }
 0x15d   : > { %v834_v45 = vmax.f32 %v804_v42, 0.0 }
 0x162   : > { %v805_v43 = vpop.f32.mrf.mxu0 }
 0x163   : > { %v806_v44 = vadd.f32 %v1776_v13, %v805_v43 }
 0x165   : > { %v835_v46 = vmax.f32 %v806_v44, 0.0 }
 0x167   : > { %v847_v47 = vpack.c.bf16 %v835_v46, %v834_v45 }
 0x169   : > { %943 = vmatmul.bf16.gmra.mxu1 %v847_v47 }
 0x16c   : > { %v808_v48 = vpop.f32.mrf.mxu0 }
 0x16d   : > { %v809_v49 = vadd.f32 %v1776_v13, %v808_v48 }
 0x16f   : > { %v836_v52 = vmax.f32 %v809_v49, 0.0 }
 0x174   : > { %v810_v50 = vpop.f32.mrf.mxu0 }
 0x175   : > { %v811_v51 = vadd.f32 %v1776_v13, %v810_v50 }
 0x177   : > { %v837_v53 = vmax.f32 %v811_v51, 0.0 }
 0x179   : > { %v848_v54 = vpack.c.bf16 %v837_v53, %v836_v52 }
 0x17b   : > { %948 = vmatmul.bf16.vlgmr.msra.gmra.mxu3 %v848_v54 }
 0x184   : > { %v813_v55 = vpop.f32.mrf.mxu2 }
 0x185   : > { %v814_v56 = vadd.f32 %v1776_v13, %v813_v55 }
 0x187   : > { %v838_v59 = vmax.f32 %v814_v56, 0.0 }
 0x18c   : > { %v815_v57 = vpop.f32.mrf.mxu2 }
 0x18d   : > { %v816_v58 = vadd.f32 %v1776_v13, %v815_v57 }
 0x18f   : > { %v839_v60 = vmax.f32 %v816_v58, 0.0 }
 0x191   : > { %v849_v61 = vpack.c.bf16 %v839_v60, %v838_v59 }
 0x193   : > { %953 = vmatmul.bf16.gmra.mxu3 %v849_v61 }
 0x198   : > { %v818_v62 = vpop.f32.mrf.mxu2 }
 0x199   : > { %v819_v63 = vadd.f32 %v1776_v13, %v818_v62 }
 0x19b   : > { %v840_v4 = vmax.f32 %v819_v63, 0.0 }
 0x1a0   : > { %v820_v1 = vpop.f32.mrf.mxu2 }
 0x1a1   : > { %v821_v3 = vadd.f32 %v1776_v13, %v820_v1 }
 0x1a3   : > { %v841_v5 = vmax.f32 %v821_v3, 0.0 }
 0x1a5   : > { %v850_v6 = vpack.c.bf16 %v841_v5, %v840_v4 }
 0x1a7   : > { %958 = vmatmul.bf16.gmra.mxu3 %v850_v6 }
 0x1ab   : > { %v929_v24 = vpop.f32.mrf.mxu1 }
 0x1ac   : > { %v930_v42 = vadd.f32 %v1392_v33, %v929_v24 }
 0x1b1   : > { %v823_v7 = vpop.f32.mrf.mxu2 }
 0x1b2   : > { %v824_v8 = vadd.f32 %v1776_v13, %v823_v7 }
 0x1b3   : > { %v931_v14 = vpop.f32.mrf.mxu1 }
 0x1b4   : > { %v842_v11 = vmax.f32 %v824_v8, 0.0  ;;  %v932_v39 = vadd.f32 %v1392_v33, %v931_v14 }
 0x1b9   : > { %v825_v9 = vpop.f32.mrf.mxu2 }
 0x1ba   : > { %v826_v10 = vadd.f32 %v1776_v13, %v825_v9  ;;  %v1275_v13 = vld [vmem:[%s1871_s7 + $0x28] sm:$0xff] }
 0x1bb   : > { %v934_v16 = vpop.f32.mrf.mxu1  ;;  %1065 = vmatpush.bf16.msrb.mxu2 %v1275_v13 }
 0x1bc   : > { %v843_v12 = vmax.f32 %v826_v10, 0.0  ;;  %v935_v43 = vadd.f32 %v1392_v33, %v934_v16 }
 0x1be   : > { %v851_v0 = vpack.c.bf16 %v843_v12, %v842_v11 }
 0x1bf   : > { %1066 = vmatpush.bf16.msrb.mxu2 %v1274_v20 }
 0x1c0   : > { %963 = vmatmul.bf16.gmra.mxu3 %v851_v0  ;;  %v1014_v0 = vld [vmem:[%s1872_s8] sm:$0x1] }
 0x1c3   : > { %v936_v27 = vpop.f32.mrf.mxu1  ;;  %1067 = vmatpush.bf16.msrb.mxu2 %v1273_v21 }
 0x1c4   : > { %v937_v44 = vadd.f32 %v1392_v33, %v936_v27 }
 0x1c7   : > { %1068 = vmatpush.bf16.msrb.mxu2 %v1272_v26 }
 0x1cb   : > { %1069 = vmatpush.bf16.msrb.mxu2 %v1271_v28 }
 0x1cd   : > { %v939_v2 = vpop.f32.mrf.mxu1 }
 0x1ce   : > { %v940_v37 = vadd.f32 %v1392_v33, %v939_v2 }
 0x1cf   : > { %1070 = vmatpush.bf16.msrb.mxu2 %v1270_v31 }
 0x1d0   : > { %v969_v50 = vmax.f32 %v930_v42, %v940_v37 }
 0x1d5   : > { %v941_v23 = vpop.f32.mrf.mxu1 }
 0x1d6   : > { %v942_v36 = vadd.f32 %v1392_v33, %v941_v23 }
 0x1d8   : > { %v970_v46 = vmax.f32 %v932_v39, %v942_v36 }
 0x1e6   : > { %v944_v30 = vpop.f32.mrf.mxu1 }
 0x1e7   : > { %v945_v38 = vadd.f32 %v1392_v33, %v944_v30 }
 0x1e9   : > { %v971_v51 = vmax.f32 %v935_v43, %v945_v38 }
 0x1ee   : > { %v946_v34 = vpop.f32.mrf.mxu1 }
 0x1ef   : > { %v947_v40 = vadd.f32 %v1392_v33, %v946_v34 }
 0x1f1   : > { %v972_v52 = vmax.f32 %v937_v44, %v947_v40 }
 0x1fe   : > { %v949_v15 = vpop.f32.mrf.mxu3 }
 0x1ff   : > { %v950_v45 = vadd.f32 %v1392_v33, %v949_v15 }
 0x201   : > { %v973_v56 = vmax.f32 %v969_v50, %v950_v45 }
 0x206   : > { %v951_v17 = vpop.f32.mrf.mxu3 }
 0x207   : > { %v952_v41 = vadd.f32 %v1392_v33, %v951_v17 }
 0x209   : > { %v974_v53 = vmax.f32 %v970_v46, %v952_v41 }
 0x216   : > { %v954_v29 = vpop.f32.mrf.mxu3 }
 0x217   : > { %v955_v47 = vadd.f32 %v1392_v33, %v954_v29 }
 0x219   : > { %v975_v58 = vmax.f32 %v971_v51, %v955_v47 }
 0x21e   : > { %v956_v22 = vpop.f32.mrf.mxu3 }
 0x21f   : > { %v957_v48 = vadd.f32 %v1392_v33, %v956_v22 }
 0x221   : > { %v976_v59 = vmax.f32 %v972_v52, %v957_v48 }
 0x22a   : > { %v959_v25 = vpop.f32.mrf.mxu3 }
 0x22b   : > { %v960_v54 = vadd.f32 %v1392_v33, %v959_v25 }
 0x22d   : > { %v977_v62 = vmax.f32 %v973_v56, %v960_v54 }
 0x232   : > { %v961_v32 = vpop.f32.mrf.mxu3 }
 0x233   : > { %v962_v49 = vadd.f32 %v1392_v33, %v961_v32 }
 0x235   : > { %v978_v60 = vmax.f32 %v974_v53, %v962_v49 }
 0x237   : > { %v981_v3 = vmax.f32 %v977_v62, %v978_v60 }
 0x243   : > { %v964_v35 = vpop.f32.mrf.mxu3 }
 0x244   : > { %v965_v55 = vadd.f32 %v1392_v33, %v964_v35 }
 0x246   : > { %v979_v63 = vmax.f32 %v975_v58, %v965_v55 }
 0x24b   : > { %v966_v57 = vpop.f32.mrf.mxu3 }
 0x24c   : > { %v967_v61 = vadd.f32 %v1392_v33, %v966_v57 }
 0x24e   : > { %v980_v1 = vmax.f32 %v976_v59, %v967_v61 }
 0x250   : > { %v982_v4 = vmax.f32 %v979_v63, %v980_v1 }
 0x252   : > { %v983_v5 = vmax.f32 %v981_v3, %v982_v4 }
 0x254   : > { %v991_v6 = vrot.slane %v983_v5, 4 }
 0x256   : > { %v992_v7 = vmax.f32 %v983_v5, %v991_v6 }
 0x258   : > { %v993_v8 = vrot.slane %v992_v7, 2 }
 0x25a   : > { %v994_v9 = vmax.f32 %v992_v7, %v993_v8 }
 0x25c   : > { %v995_v10 = vrot.slane %v994_v9, 1 }
 0x25e   : > { %v996_v11 = vmax.f32 %v994_v9, %v995_v10 }
 0x260   : > { %v997_v12 = vpack.c.bf16 %v996_v11, %v996_v11 }
 0x262   : > { %1071 = vmatmul.bf16.vlgmr.msrb.gmra.mxu2 %v997_v12 }
 0x2e5   : > { %v1072_v24 = vpop.f32.mrf.mxu2 }
 0x2e6   : > { %v1073_v14 = vadd.f32 %v1072_v24, %v1014_v0 }
 0x2e8   : > { %1077 = vst.msk [vmem:[%s347_s18] sm:$0x1] %vm1076_vm1, %v1073_v14 }
 0x2e9   : > { %1420 = shalt.err (!%p1417_p5)
}
 0x2ea   : > { %1290 = dma.vmem_to_hbm [thread:$0]  (%p1566_p4), %s1090_s20, 16, %s1092_s27, %s1079_s23  }
 0x2ed   : > { %v1074_v15 = vpop.f32.mrf.mxu2 }
 0x2ee PF: > { %p1296_p6 = scmp.ge.s32.totalorder %s1471_s14, 2  ;;  %s1103_s25 = sand.u32 1, %s1451_s30  }
 0x2ef   : > { %s1104_s16 = scalar_lea.sflag [#allocation4], %s1103_s25 }
 0x2f0   : > { %p1293_p7 = pnand %p1296_p6, %p1573_p8 }
 0x2f2   : > { %p1294_p9 = pneg %p1293_p7 }
 0x2f4   : > { %1446 = dma.done.wait (%p1294_p9), %s1104_s16, 16  }
 0x2f5   : > { %1448 = vsyncadd (%p1294_p9), %s1104_s16, 4294967280  ;;  %s22_s14 = sadd.s32 1, %s1471_s14   ;;  %s1878_s30 = smov %s1455_s10 }
 0x2f6   : > { %p19_p10 = scmp.ge.s32.totalorder %s22_s14, 4   ;;  %s1879_s10 = smov %s1459_s11 }
 0x2f7   : > { %s1880_s11 = smov %s1579_s22  ;;  %s1881_s12 = smov %s1467_s13 }
 0x2f8   : > { %s1882_s13 = smov %s1884_s17  ;;  %21 = sbr.rel (!%p19_p10) target bundleno = 6 (0x6), region = 99 }
 0x2fd   :  { %1109 = vsyncpa [#allocation4], 1 }
 0x2fe   :  { %1111 = vsyncpa [#allocation4 + $0x1], 1 }

</bundles_post_ra>
